<compile_context>
chip_gen: v5e
topology: v5e:2x2
jax: 0.10.0
libtpu: 0.0.40
codegen_flags: <defaults>
</compile_context>

<pallas_src>
import jax
import jax.numpy as jnp
from jax.experimental import pallas as pl
from jax.experimental.pallas import tpu as pltpu


def _make_kernel(num_classes: int, epsilon: float, batch: int, tile_b: int):
    keep = 1.0 - epsilon
    smooth = epsilon / float(num_classes)
    kf = float(num_classes)

    def kernel(logits_ref, xt_ref, out_ref):
        i = pl.program_id(0)

        x = logits_ref[...]                                        # (TB, K) input dtype
        tb = x.shape[0]

        # Row max is exact in the input dtype (bf16 max loses nothing); promote for the shift.
        m = jnp.max(x, axis=1, keepdims=True).astype(jnp.float32)  # (TB, 1)   XLU
        xf = x.astype(jnp.float32)                                 # (TB, K)

        # Reassociated: sum over raw logits so `shifted` is only live for the exp path.
        sum_x = jnp.sum(xf, axis=1, keepdims=True)                 # (TB, 1)   XLU
        shifted = xf - m                                           # (TB, K)   VPU
        sum_exp = jnp.sum(jnp.exp(shifted), axis=1, keepdims=True) # (TB, 1)   EUP + XLU
        lse = jnp.log(sum_exp)                                     # (TB, 1)

        # Target logit gathered in XLA (hoisted out of the kernel): no iota / select here.
        shifted_t = xt_ref[...] - m                                # (TB, 1)
        sum_shifted = sum_x - kf * m                               # == sum_j (x_j - m)

        # loss_i = (1-eps)*(lse - shifted_t) + (eps/K)*(K*lse - sum_shifted)
        row_loss = keep * (lse - shifted_t) + smooth * (kf * lse - sum_shifted)

        # Mask rows past the true batch size (ragged last tile / block padding).
        # where-select so padded-row NaN/Inf never propagate (do NOT turn into a multiply).
        row = i * tile_b + jax.lax.broadcasted_iota(jnp.int32, (tb, 1), 0)
        row_loss = jnp.where(row < batch, row_loss, 0.0)

        partial = jnp.sum(row_loss)                                # scalar tile partial
        # lane/sublane-dense unmasked store of the partial (replicated across the block)
        out_ref[...] = jnp.broadcast_to(partial, out_ref.shape).astype(jnp.float32)

    return kernel


def cross_entropy_label_smooth(logits, targets, num_classes, epsilon=0.1, tile_b=None):
    """logits: (B, K) float (f32 or bf16), targets: (B,) int class indices. Returns scalar."""
    B, K = logits.shape
    assert K == num_classes

    itemsize = jnp.dtype(logits.dtype).itemsize
    # Packing granule along the sublane (batch) axis for the input dtype.
    granule = 8 if itemsize >= 4 else (16 if itemsize == 2 else 32)

    if tile_b is None:
        # Per row: double-buffered input block (2 * itemsize) + ~3 f32 (tb, K) intermediates
        # (f32 copy, shifted, exp) that the compiler may or may not fuse. Target ~24 MiB.
        bytes_per_row = K * (2 * itemsize + 12)
        budget = 24 * 1024 * 1024
        tb = (budget // max(1, bytes_per_row) // granule) * granule
        tb = max(granule, min(1024, tb))
        tile_b = min(tb, pl.cdiv(B, granule) * granule)
    assert tile_b % granule == 0, (tile_b, granule)

    num_tiles = pl.cdiv(B, tile_b)
    kernel = _make_kernel(num_classes, epsilon, B, tile_b)

    # Hoisted gather: tiny (B, 1) f32 side input replaces the int32 targets stream.
    x_t = jnp.take_along_axis(
        logits, targets.astype(jnp.int32).reshape(B, 1), axis=1
    ).astype(jnp.float32)

    cost = pl.CostEstimate(
        flops=5 * B * K,
        transcendentals=B * K,
        bytes_accessed=B * K * itemsize + B * 4 + num_tiles * 8 * 128 * 4,
    )

    partials = pl.pallas_call(
        kernel,
        out_shape=jax.ShapeDtypeStruct((num_tiles, 8, 128), jnp.float32),
        grid=(num_tiles,),
        in_specs=[
            pl.BlockSpec((tile_b, K), lambda i: (i, 0)),   # logits tile (full class extent)
            pl.BlockSpec((tile_b, 1), lambda i: (i, 0)),   # gathered target logits slice
        ],
        out_specs=pl.BlockSpec((1, 8, 128), lambda i: (i, 0, 0)),
        compiler_params=pltpu.CompilerParams(
            dimension_semantics=("parallel",),             # megacore-shardable on v7x
            vmem_limit_bytes=48 * 1024 * 1024,             # explicit; fits 64 MiB v7x VMEM
        ),
        cost_estimate=cost,
    )(logits, x_t)

    # tiny final reduction + mean over batch in JAX
    return jnp.sum(partials[:, 0, 0]) / jnp.float32(B)


def _reference(logits, targets, num_classes, epsilon=0.1):
    log_probs = jax.nn.log_softmax(logits.astype(jnp.float32), axis=1)
    onehot = jax.nn.one_hot(targets, num_classes, dtype=jnp.float32)
    smoothed = (1.0 - epsilon) * onehot + epsilon / num_classes
    return jnp.sum(jnp.mean(-smoothed * log_probs, axis=0))


if __name__ == "__main__":
    key = jax.random.PRNGKey(0)

    # Test 1: small f32 case, single tile.
    B1, K1 = 8, 16
    k1, k2, k3, k4 = jax.random.split(key, 4)
    logits1 = jax.random.normal(k1, (B1, K1), dtype=jnp.float32)
    targets1 = jax.random.randint(k2, (B1,), 0, K1, dtype=jnp.int32)
    loss1 = jax.block_until_ready(
        cross_entropy_label_smooth(logits1, targets1, num_classes=K1, epsilon=0.1))
    ref1 = _reference(logits1, targets1, num_classes=K1, epsilon=0.1)
    assert jnp.allclose(loss1, ref1, rtol=1e-5, atol=1e-5), (loss1, ref1)

    # Test 2: bf16 logits, multiple batch tiles with a ragged last tile.
    # tile_b=16 matches the bf16 packing granule (review: multiple of 16, not 8).
    B2, K2 = 20, 256
    logits2 = jax.random.normal(k3, (B2, K2), dtype=jnp.float32).astype(jnp.bfloat16)
    targets2 = jax.random.randint(k4, (B2,), 0, K2, dtype=jnp.int32)
    loss2 = jax.block_until_ready(
        cross_entropy_label_smooth(logits2, targets2, num_classes=K2, epsilon=0.1, tile_b=16))
    ref2 = _reference(logits2, targets2, num_classes=K2, epsilon=0.1)
    assert jnp.allclose(loss2, ref2, rtol=1e-4, atol=1e-4), (loss2, ref2)

    # Test 3: f32, auto tile sizing with a ragged last tile.
    B3, K3 = 24, 128
    k5, k6 = jax.random.split(k1)
    logits3 = jax.random.normal(k5, (B3, K3), dtype=jnp.float32)
    targets3 = jax.random.randint(k6, (B3,), 0, K3, dtype=jnp.int32)
    loss3 = jax.block_until_ready(
        cross_entropy_label_smooth(logits3, targets3, num_classes=K3, epsilon=0.1, tile_b=16))
    ref3 = _reference(logits3, targets3, num_classes=K3, epsilon=0.1)
    assert jnp.allclose(loss3, ref3, rtol=1e-5, atol=1e-5), (loss3, ref3)

    print("KERNEL_OK")
</pallas_src>

<mosaic_0001>
module attributes {stable_mosaic.version = 11 : i64} {
  func.func @kernel(%arg0: i32, %arg1: memref<8x16xf32, #tpu.memory_space<vmem>>, %arg2: memref<8x1xf32, #tpu.memory_space<vmem>>, %arg3: memref<1x8x128xf32, #tpu.memory_space<vmem>>) attributes {dimension_semantics = [#tpu.dimension_semantics<parallel>], iteration_bounds = array<i64: 1>, scalar_prefetch = 0 : i64, scratch_operands = 0 : i64, tpu.core_type = #tpu.core_type<tc>, window_params = [{transform_indices = @transform_0, window_bounds = array<i64: 8, 16>}, {transform_indices = @transform_1, window_bounds = array<i64: 8, 1>}, {transform_indices = @transform_2, window_bounds = array<i64: 1, 8, 128>}]} {
    %c0 = arith.constant 0 : index
    %c0_0 = arith.constant 0 : index
    %0 = vector.load %arg1[%c0, %c0_0] : memref<8x16xf32, #tpu.memory_space<vmem>>, vector<8x16xf32>
    %cst = arith.constant dense<0xFF800000> : vector<8xf32>
    %1 = vector.multi_reduction <maximumf>, %0, %cst [1] : vector<8x16xf32> to vector<8xf32>
    %2 = vector.shape_cast %1 : vector<8xf32> to vector<8x1xf32>
    %cst_1 = arith.constant dense<0.000000e+00> : vector<8xf32>
    %3 = vector.multi_reduction <add>, %0, %cst_1 [1] : vector<8x16xf32> to vector<8xf32>
    %4 = vector.shape_cast %3 : vector<8xf32> to vector<8x1xf32>
    %5 = vector.broadcast %2 : vector<8x1xf32> to vector<8x16xf32>
    %6 = arith.subf %0, %5 : vector<8x16xf32>
    %7 = math.exp %6 : vector<8x16xf32>
    %cst_2 = arith.constant dense<0.000000e+00> : vector<8xf32>
    %8 = vector.multi_reduction <add>, %7, %cst_2 [1] : vector<8x16xf32> to vector<8xf32>
    %9 = vector.shape_cast %8 : vector<8xf32> to vector<8x1xf32>
    %10 = math.log %9 : vector<8x1xf32>
    %c0_3 = arith.constant 0 : index
    %c0_4 = arith.constant 0 : index
    %11 = vector.load %arg2[%c0_3, %c0_4] : memref<8x1xf32, #tpu.memory_space<vmem>>, vector<8x1xf32>
    %12 = arith.subf %11, %2 : vector<8x1xf32>
    %cst_5 = arith.constant 1.600000e+01 : f32
    %13 = vector.broadcast %cst_5 : f32 to vector<8x1xf32>
    %14 = arith.mulf %13, %2 : vector<8x1xf32>
    %15 = arith.subf %4, %14 : vector<8x1xf32>
    %16 = arith.subf %10, %12 : vector<8x1xf32>
    %cst_6 = arith.constant 0.899999976 : f32
    %17 = vector.broadcast %cst_6 : f32 to vector<8x1xf32>
    %18 = arith.mulf %17, %16 : vector<8x1xf32>
    %cst_7 = arith.constant 1.600000e+01 : f32
    %19 = vector.broadcast %cst_7 : f32 to vector<8x1xf32>
    %20 = arith.mulf %19, %10 : vector<8x1xf32>
    %21 = arith.subf %20, %15 : vector<8x1xf32>
    %cst_8 = arith.constant 6.250000e-03 : f32
    %22 = vector.broadcast %cst_8 : f32 to vector<8x1xf32>
    %23 = arith.mulf %22, %21 : vector<8x1xf32>
    %24 = arith.addf %18, %23 : vector<8x1xf32>
    %c8_i32 = arith.constant 8 : i32
    %25 = arith.muli %arg0, %c8_i32 : i32
    %26 = tpu.iota {dimensions = array<i32: 0>} : vector<8x1xi32>
    %27 = vector.broadcast %25 : i32 to vector<8x1xi32>
    %28 = arith.addi %27, %26 : vector<8x1xi32>
    %c8_i32_9 = arith.constant 8 : i32
    %29 = vector.broadcast %c8_i32_9 : i32 to vector<8x1xi32>
    %30 = arith.cmpi slt, %28, %29 : vector<8x1xi32>
    %cst_10 = arith.constant 0.000000e+00 : f32
    %31 = vector.broadcast %cst_10 : f32 to vector<8x1xf32>
    %32 = arith.select %30, %24, %31 : vector<8x1xi1>, vector<8x1xf32>
    %33 = vector.shape_cast %32 : vector<8x1xf32> to vector<1x8x1xf32>
    %cst_11 = arith.constant dense<0.000000e+00> : vector<1xf32>
    %34 = vector.multi_reduction <add>, %33, %cst_11 [1, 2] : vector<1x8x1xf32> to vector<1xf32>
    %35 = vector.shape_cast %34 : vector<1xf32> to vector<1x1x1xf32>
    %36 = vector.extract %35[0, 0, 0] : f32 from vector<1x1x1xf32>
    %37 = vector.broadcast %36 : f32 to vector<1x8x128xf32>
    %c0_12 = arith.constant 0 : index
    %c0_13 = arith.constant 0 : index
    %c0_14 = arith.constant 0 : index
    %38 = vector.load %arg3[%c0_12, %c0_13, %c0_14] : memref<1x8x128xf32, #tpu.memory_space<vmem>>, vector<1x8x128xf32>
    tpu.vector_store %arg3[%c0_12, %c0_13, %c0_14], %37 {strides = array<i32>} : memref<1x8x128xf32, #tpu.memory_space<vmem>>, vector<1x8x128xf32>,
    return
  }
  func.func @transform_0(%arg0: i32) -> (i32, i32) {
    %c0_i32 = arith.constant 0 : i32
    %c0_i32_0 = arith.constant 0 : i32
    return %arg0, %c0_i32 : i32, i32
  }
  func.func @transform_1(%arg0: i32) -> (i32, i32) {
    %c0_i32 = arith.constant 0 : i32
    %c0_i32_0 = arith.constant 0 : i32
    return %arg0, %c0_i32 : i32, i32
  }
  func.func @transform_2(%arg0: i32) -> (i32, i32, i32) {
    %c0_i32 = arith.constant 0 : i32
    %c0_i32_0 = arith.constant 0 : i32
    %c0_i32_1 = arith.constant 0 : i32
    return %arg0, %c0_i32, %c0_i32_0 : i32, i32, i32
  }
}

</mosaic_0001>

<bundles_post_ra>
// kernel: tpu_custom_call.1
= control target key start
LH: loop header
LB: loop body
LE: loop exit
PB: predicated region body
PF: predicated region fallthrough
CT: control target
= control target key end

     0   :  { %vm13_vm0 = vcmask 130048   ;;  %s132_s0 = inlined_call_operand.vmem [shape: f32[8,16], index: 0, kind: input, shape index: {}]   ;;  %s133_s1 = inlined_call_operand.vmem [shape: f32[8,1], index: 1, kind: input, shape index: {}]   ;;  %s134_s2 = inlined_call_operand.hbm [shape: f32[1,8,128], index: 2, kind: output, shape index: {}]  }
   0x1   :  { %v12_v0 = vld [vmem:[%s132_s0] sm:$0xff] }
   0x2   :  { %7 = vsyncpa [#allocation3], 0  ;;  %v14_v1 = vsel %vm13_vm0, %v12_v0, -inf  ;;  %v17_v2 = vsel %vm13_vm0, %v12_v0, 0.0  ;;  %v28_v9 = vld [vmem:[%s133_s1] sm:$0xff]  ;;  %vm45_vm1 = vcmask 7168  }
   0x3   :  { %15 = vmax.xlane.f32.xlu0 %v14_v1  ;;  %18 = vadd.xlane.f32.xlu1 %v17_v2  ;;  %s107_s0 = smov [#allocation2]   ;;  %s65_s15 = sshll.u32 %s134_s2, 4  ;;  %s66_s15 = int_to_ptr.hbm [resolvable:$true] %s65_s15 }
   0x4   :  { %s63_s1 = sshll.u32 %s107_s0, 4  ;;  %s64_s1 = int_to_ptr.vmem [resolvable:$true] %s63_s1 }
  0x76   :  { %v16_v3 = vpop.xlane.xlu0 %15  ;;  %v19_v12 = vpop.xlane.xlu1 %18 }
  0x77   :  { %v20_v4 = vsub.f32 %v12_v0, %v16_v3  ;;  %v30_v10 = vmul.f32 16.0, %v16_v3  ;;  %v29_v13 = vsub.f32 %v28_v9, %v16_v3 }
  0x79   :  { %v21_v5 = vmul.f32 1.442695, %v20_v4  ;;  %v31_v15 = vsub.f32 %v19_v12, %v30_v10 }
  0x7b   :  { %77 = vpow2.f32 %v21_v5 }
  0x81   :  { %v78_v6 = vpop.eup %77 }
  0x82   :  { %v23_v7 = vsel %vm13_vm0, %v78_v6, 0.0 }
  0x83   :  { %24 = vadd.xlane.f32.xlu0 %v23_v7 }
  0xf6   :  { %v25_v8 = vpop.xlane.xlu0 %24 }
  0xf7   :  { %79 = vlog2.f32 %v25_v8 }
  0xfd   :  { %v80_v11 = vpop.eup %79 }
  0xfe   :  { %v27_v14 = vmul.f32 0.6931472, %v80_v11 }
 0x100   :  { %v32_v16 = vsub.f32 %v27_v14, %v29_v13  ;;  %v34_v17 = vmul.f32 16.0, %v27_v14 }
 0x102   :  { %v35_v18 = vsub.f32 %v34_v17, %v31_v15  ;;  %v33_v19 = vmul.f32 0.9, %v32_v16 }
 0x104   :  { %v36_v20 = vmul.f32 0.00625, %v35_v18 }
 0x106   :  { %v37_v21 = vadd.f32 %v36_v20, %v33_v19 }
 0x108   :  { %v46_v22 = vsel %vm45_vm1, %v37_v21, 0.0 }
 0x109   :  { %47 = vadd.xlane.f32.xlu1 %v46_v22 }
 0x17c   :  { %v48_v23 = vpop.xlane.xlu1 %47 }
 0x17d   :  { %v49_v24 = vrot.slane %v48_v23, 4 }
 0x17f   :  { %v50_v25 = vadd.f32 %v49_v24, %v48_v23 }
 0x181   :  { %v51_v26 = vrot.slane %v50_v25, 2 }
 0x183   :  { %v52_v27 = vadd.f32 %v51_v26, %v50_v25 }
 0x185   :  { %v53_v28 = vrot.slane %v52_v27, 1 }
 0x187   :  { %v54_v29 = vadd.f32 %v53_v28, %v52_v27 }
 0x189   :  { %74 = vpush %v54_v29 }
 0x1ba   :  { %s75_s16 = spop %74 }
 0x1bb   :  { %v56_v30 = vstv %s75_s16 }
 0x1bc   :  { %57 = vst [vmem:[#allocation2] sm:$0xff] %v56_v30 }
 0x1bd   :  { %68 = dma.vmem_to_hbm [thread:$0]  %s64_s1, 128, %s66_s15, [#allocation3]  }
 0x1be   :  { %105 = dma.done.wait [#allocation3], 128  }
 0x1bf   :  { %106 = vsyncadd [#allocation3], 4294967168 }
 0x1c0   :  { %73 = vsyncpa [#allocation3], 1 }

</bundles_post_ra>
